<compile_context>
chip_gen: v5e
topology: v5e:2x2
jax: 0.10.0
libtpu: 0.0.40
codegen_flags: <defaults>
</compile_context>

<pallas_src>
import functools
import math

import jax
import jax.numpy as jnp
from jax.experimental import pallas as pl
from jax.experimental.pallas import tpu as pltpu


def _fused_mlp_kernel(*refs, num_layers):
    """refs = (x_ref, w0_ref, b0_ref, w1_ref, b1_ref, ..., o_ref).

    Static Python loop over layers -> fully unrolled at trace time. The running
    activation is carried as a traced value (vreg/VMEM resident); only the final
    sigmoid output is written back to HBM.
    """
    x_ref = refs[0]
    o_ref = refs[-1]

    h = x_ref[...].astype(jnp.float32)
    for i in range(num_layers):
        w = refs[1 + 2 * i][...]
        b = refs[2 + 2 * i][...]
        # MXU matmul with f32 accumulate; bias add broadcast once per layer.
        y = jnp.dot(h, w, preferred_element_type=jnp.float32) + b
        # tanh / sigmoid lower to the EUP (own VLIW slot).
        h = jnp.tanh(y) if i < num_layers - 1 else jax.nn.sigmoid(y)
    o_ref[...] = h.astype(o_ref.dtype)


def _flatten_params(params):
    flat = []
    for w, b in params:
        flat.append(w)
        flat.append(b)
    return flat


def _fused_forward_whole(x, params):
    """Small-batch path: no grid, everything resident in VMEM, one kernel call."""
    num_layers = len(params)
    B = x.shape[0]
    kernel = functools.partial(_fused_mlp_kernel, num_layers=num_layers)
    vmem = pl.BlockSpec(memory_space=pltpu.MemorySpace.VMEM)
    return pl.pallas_call(
        kernel,
        out_shape=jax.ShapeDtypeStruct((B, 1), jnp.float32),
        in_specs=[vmem] * (1 + 2 * num_layers),
        out_specs=vmem,
    )(x, *_flatten_params(params))


def _fused_forward_batched(x, params, tb):
    """Large-batch path: tile only the batch axis; weights DMA'd once (constant
    index_map) and kept resident; batch axis marked 'parallel' for megacore/v7x."""
    num_layers = len(params)
    B, Fin = x.shape
    kernel = functools.partial(_fused_mlp_kernel, num_layers=num_layers)

    in_specs = [pl.BlockSpec((tb, Fin), lambda i: (i, 0))]
    for w, b in params:
        in_specs.append(pl.BlockSpec(w.shape, lambda i: (0, 0)))
        in_specs.append(pl.BlockSpec(b.shape, lambda i: (0, 0)))

    return pl.pallas_call(
        kernel,
        out_shape=jax.ShapeDtypeStruct((B, 1), jnp.float32),
        grid=(B // tb,),
        in_specs=in_specs,
        out_specs=pl.BlockSpec((tb, 1), lambda i: (i, 0)),
        compiler_params=pltpu.CompilerParams(
            dimension_semantics=("parallel",),
        ),
    )(x, *_flatten_params(params))


def dynamic_net_forward(x, params, *, batch_tile=256):
    """Forward pass: tanh on all hidden layers, sigmoid on the final (size-1) layer.

    One fused pallas_call for the whole network. If the batch is large (and a
    multiple of both 8 sublanes and the tile size), tile only the batch axis.
    """
    B = x.shape[0]
    if B > batch_tile and B % batch_tile == 0 and batch_tile % 8 == 0:
        return _fused_forward_batched(x, params, batch_tile)
    return _fused_forward_whole(x, params)


def init_dynamic_net_params(key, num_features, hidden_layers):
    """Deterministic init mirroring nn.Linear's default U(-1/sqrt(fan_in), 1/sqrt(fan_in))."""
    sizes = [num_features] + [h["No_of_Circles"] for h in hidden_layers] + [1]
    params = []
    for fin, fout in zip(sizes[:-1], sizes[1:]):
        key, kw, kb = jax.random.split(key, 3)
        bound = 1.0 / math.sqrt(fin)
        w = jax.random.uniform(kw, (fin, fout), jnp.float32, -bound, bound)
        b = jax.random.uniform(kb, (1, fout), jnp.float32, -bound, bound)
        params.append((w, b))
    return params


def _reference_forward(x, params):
    """Plain-JAX reference (same math) for correctness checking."""
    h = x
    n = len(params)
    for i, (w, b) in enumerate(params):
        h = h @ w + b
        h = jnp.tanh(h) if i < n - 1 else jax.nn.sigmoid(h)
    return h


if __name__ == "__main__":
    key = jax.random.PRNGKey(0)
    k_in, k_params, k_big = jax.random.split(key, 3)

    num_features = 32
    hidden_layers = [{"No_of_Circles": 32}, {"No_of_Circles": 16}]
    params = init_dynamic_net_params(k_params, num_features, hidden_layers)

    # Small batch: single fused pallas_call, no grid.
    batch = 8
    x = jax.random.normal(k_in, (batch, num_features), jnp.float32)
    out = jax.block_until_ready(dynamic_net_forward(x, params))
    ref = _reference_forward(x, params)
    assert out.shape == (batch, 1)
    assert jnp.allclose(out, ref, atol=1e-5, rtol=1e-5)

    # Larger batch: exercises the batch-tiled ("parallel") path with resident weights.
    big_batch = 512
    xb = jax.random.normal(k_big, (big_batch, num_features), jnp.float32)
    outb = jax.block_until_ready(dynamic_net_forward(xb, params, batch_tile=256))
    refb = _reference_forward(xb, params)
    assert outb.shape == (big_batch, 1)
    assert jnp.allclose(outb, refb, atol=1e-5, rtol=1e-5)

    print("KERNEL_OK")
</pallas_src>

<mosaic_0001>
module attributes {stable_mosaic.version = 11 : i64} {
  func.func @_fused_mlp_kernel(%arg0: memref<8x32xf32, #tpu.memory_space<vmem>>, %arg1: memref<32x32xf32, #tpu.memory_space<vmem>>, %arg2: memref<1x32xf32, #tpu.memory_space<vmem>>, %arg3: memref<32x16xf32, #tpu.memory_space<vmem>>, %arg4: memref<1x16xf32, #tpu.memory_space<vmem>>, %arg5: memref<16x1xf32, #tpu.memory_space<vmem>>, %arg6: memref<1x1xf32, #tpu.memory_space<vmem>>, %arg7: memref<8x1xf32, #tpu.memory_space<vmem>>) attributes {dimension_semantics = [], scalar_prefetch = 0 : i64, scratch_operands = 0 : i64, tpu.core_type = #tpu.core_type<tc>} {
    %c0 = arith.constant 0 : index
    %c0_0 = arith.constant 0 : index
    %0 = vector.load %arg0[%c0, %c0_0] : memref<8x32xf32, #tpu.memory_space<vmem>>, vector<8x32xf32>
    %c0_1 = arith.constant 0 : index
    %c0_2 = arith.constant 0 : index
    %1 = vector.load %arg1[%c0_1, %c0_2] : memref<32x32xf32, #tpu.memory_space<vmem>>, vector<32x32xf32>
    %c0_3 = arith.constant 0 : index
    %c0_4 = arith.constant 0 : index
    %2 = vector.load %arg2[%c0_3, %c0_4] : memref<1x32xf32, #tpu.memory_space<vmem>>, vector<1x32xf32>
    %cst = arith.constant dense<0.000000e+00> : vector<8x32xf32>
    %3 = tpu.matmul %0, %1, %cst {dimension_numbers = #tpu.dot_dimension_numbers<[1], [0], [0], [1], [0, 0, 1, 1], [], []>} : vector<8x32xf32>, vector<32x32xf32>, vector<8x32xf32> -> vector<8x32xf32>
    %4 = vector.broadcast %2 : vector<1x32xf32> to vector<8x32xf32>
    %5 = arith.addf %3, %4 : vector<8x32xf32>
    %6 = math.tanh %5 : vector<8x32xf32>
    %c0_5 = arith.constant 0 : index
    %c0_6 = arith.constant 0 : index
    %7 = vector.load %arg3[%c0_5, %c0_6] : memref<32x16xf32, #tpu.memory_space<vmem>>, vector<32x16xf32>
    %c0_7 = arith.constant 0 : index
    %c0_8 = arith.constant 0 : index
    %8 = vector.load %arg4[%c0_7, %c0_8] : memref<1x16xf32, #tpu.memory_space<vmem>>, vector<1x16xf32>
    %cst_9 = arith.constant dense<0.000000e+00> : vector<8x16xf32>
    %9 = tpu.matmul %6, %7, %cst_9 {dimension_numbers = #tpu.dot_dimension_numbers<[1], [0], [0], [1], [0, 0, 1, 1], [], []>} : vector<8x32xf32>, vector<32x16xf32>, vector<8x16xf32> -> vector<8x16xf32>
    %10 = vector.broadcast %8 : vector<1x16xf32> to vector<8x16xf32>
    %11 = arith.addf %9, %10 : vector<8x16xf32>
    %12 = math.tanh %11 : vector<8x16xf32>
    %c0_10 = arith.constant 0 : index
    %c0_11 = arith.constant 0 : index
    %13 = vector.load %arg5[%c0_10, %c0_11] : memref<16x1xf32, #tpu.memory_space<vmem>>, vector<16x1xf32>
    %c0_12 = arith.constant 0 : index
    %c0_13 = arith.constant 0 : index
    %14 = vector.load %arg6[%c0_12, %c0_13] : memref<1x1xf32, #tpu.memory_space<vmem>>, vector<1x1xf32>
    %cst_14 = arith.constant dense<0.000000e+00> : vector<8x1xf32>
    %15 = tpu.matmul %12, %13, %cst_14 {dimension_numbers = #tpu.dot_dimension_numbers<[1], [0], [0], [1], [0, 0, 1, 1], [], []>} : vector<8x16xf32>, vector<16x1xf32>, vector<8x1xf32> -> vector<8x1xf32>
    %16 = vector.broadcast %14 : vector<1x1xf32> to vector<8x1xf32>
    %17 = arith.addf %15, %16 : vector<8x1xf32>
    %18 = arith.negf %17 : vector<8x1xf32>
    %19 = math.exp %18 : vector<8x1xf32>
    %cst_15 = arith.constant 1.000000e+00 : f32
    %20 = vector.broadcast %cst_15 : f32 to vector<8x1xf32>
    %21 = arith.addf %20, %19 : vector<8x1xf32>
    %22 = arith.divf %20, %21 : vector<8x1xf32>
    %c0_16 = arith.constant 0 : index
    %c0_17 = arith.constant 0 : index
    %23 = vector.load %arg7[%c0_16, %c0_17] : memref<8x1xf32, #tpu.memory_space<vmem>>, vector<8x1xf32>
    tpu.vector_store %arg7[%c0_16, %c0_17], %22 {strides = array<i32>} : memref<8x1xf32, #tpu.memory_space<vmem>>, vector<8x1xf32>,
    return
  }
}

</mosaic_0001>

<bundles_post_ra>
// kernel: tpu_custom_call.1
= control target key start
LH: loop header
LB: loop body
LE: loop exit
PB: predicated region body
PF: predicated region fallthrough
CT: control target
= control target key end

     0   :  { %vm37_vm0 = vcmask 261120   ;;  %vm100_vm1 = vcmask 130048   ;;  %vm143_vm5 = vcmask 7168   ;;  %s251_s1 = inlined_call_operand.vmem [shape: f32[32,32], index: 1, kind: input, shape index: {}]   ;;  %s252_s2 = inlined_call_operand.vmem [shape: f32[1,32], index: 2, kind: input, shape index: {}]   ;;  %s253_s0 = inlined_call_operand.vmem [shape: f32[8,32], index: 0, kind: input, shape index: {}]   ;;  %s254_s4 = inlined_call_operand.vmem [shape: f32[1,16], index: 4, kind: input, shape index: {}]   ;;  %s255_s3 = inlined_call_operand.vmem [shape: f32[32,16], index: 3, kind: input, shape index: {}]   ;;  %s256_s5 = inlined_call_operand.vmem [shape: f32[16,1], index: 5, kind: input, shape index: {}]   ;;  %s257_s6 = inlined_call_operand.<no memory space> [shape: f32[1,1], index: 6, kind: input, shape index: {}]   ;;  %s258_s7 = inlined_call_operand.vmem [shape: f32[8,1], index: 7, kind: output, shape index: {}]  }
   0x1   :  { %v32_v0 = vld [vmem:[%s251_s1 + $0x18] sm:$0xff]  ;;  %v31_v1 = vld [vmem:[%s251_s1 + $0x10] sm:$0xff]  ;;  %v30_v2 = vld [vmem:[%s251_s1 + $0x8] sm:$0xff]  ;;  %v12_v15 = vstv %s257_s6 }
   0x2   :  { %53 = vmatpush.msra.mxu0 %v32_v0  ;;  %v29_v3 = vld [vmem:[%s251_s1] sm:$0xff]  ;;  %v65_v5 = vld [vmem:[%s255_s3 + $0x18] sm:$0xff]  ;;  %v64_v6 = vld [vmem:[%s255_s3 + $0x10] sm:$0xff]  ;;  %13 = vst [vmem:[#allocation2] sm:$0x1] %v12_v15 }
   0x3   :  { %v28_v4 = vld [vmem:[%s253_s0] sm:$0xff]  ;;  %85 = vmatpush.msra.mxu1 %v65_v5  ;;  %v63_v7 = vld [vmem:[%s255_s3 + $0x8] sm:$0xff] }
   0x4   :  { %54 = vmatpush.msra.mxu0 %v31_v1  ;;  %v62_v8 = vld [vmem:[%s255_s3] sm:$0xff]  ;;  %v95_v13 = vld [vmem:[%s256_s5 + $0x8] sm:$0xff] }
   0x5   :  { %86 = vmatpush.msra.mxu1 %v64_v6  ;;  %v153_v9 = vld [vmem:[%s252_s2] ss:$0 sm:$0xff]  ;;  %118 = vmatpush.msra.mxu2 %v95_v13 }
   0x6   :  { %55 = vmatpush.msra.mxu0 %v30_v2  ;;  %v94_v14 = vld [vmem:[%s256_s5] sm:$0xff] }
   0x7   :  { %87 = vmatpush.msra.mxu1 %v63_v7  ;;  %119 = vmatpush.msra.mxu2 %v94_v14  ;;  %v154_v16 = vld [vmem:[%s254_s4] ss:$0 sm:$0xff] }
   0x8   :  { %56 = vmatpush.msra.mxu0 %v29_v3 }
   0x9   :  { %149 = vmatmul.msk.f32.vlgmr.msra.gmra.mxu0 %vm37_vm0, %v28_v4  ;;  %88 = vmatpush.msra.mxu1 %v62_v8  ;;  %v155_v20 = vld [vmem:[#allocation2] ss:$0 sm:$0xff] }
  0x86   :  { %v58_v10 = vpop.f32.mrf.mxu0 }
  0x87   :  { %v59_v11 = vadd.f32 %v153_v9, %v58_v10 }
  0x89   :  { %156 = vtanh.f32 %v59_v11 }
  0x8f   :  { %v157_v12 = vpop.eup %156 }
  0x90   :  { %150 = vmatmul.msk.f32.vlgmr.msra.gmra.mxu1 %vm37_vm0, %v157_v12 }
 0x10d   :  { %v90_v17 = vpop.f32.mrf.mxu1 }
 0x10e   :  { %v91_v18 = vadd.f32 %v154_v16, %v90_v17 }
 0x110   :  { %158 = vtanh.f32 %v91_v18 }
 0x116   :  { %v159_v19 = vpop.eup %158 }
 0x117   :  { %151 = vmatmul.msk.f32.vlgmr.msra.gmra.mxu2 %vm100_vm1, %v159_v19 }
 0x19a   :  { %v121_v21 = vpop.f32.mrf.mxu2 }
 0x19b   :  { %v122_v22 = vadd.f32 %v155_v20, %v121_v21 }
 0x19d   :  { %v152_v23 = vmul.f32 -1.442695, %v122_v22 }
 0x19f   :  { %160 = vpow2.f32 %v152_v23 }
 0x1a5   :  { %v161_v24 = vpop.eup %160 }
 0x1a6   :  { %v127_v25 = vadd.f32 1.0, %v161_v24 }
 0x1a8   :  { %162 = vrcp.f32 %v127_v25  ;;  %v139_v29 = vand.u32 2147483648, %v127_v25  ;;  %v137_v31 = vand.u32 2147483647, %v127_v25  ;;  %vm133_vm3 = vweird.f32 %v127_v25 }
 0x1aa   :  { %v140_v33 = vor.u32 1.1754944e-38, %v139_v29  ;;  %vm138_vm6 = vcmp.eq.f32.partialorder %v137_v31, 8.507059e+37 }
 0x1ae   :  { %v163_v26 = vpop.eup %162 }
 0x1af   :  { %v129_v27 = vmul.f32 %v163_v26, %v127_v25  ;;  %vm134_vm2 = vweird.f32 %v163_v26 }
 0x1b0   :  { %vm135_vm4 = vmor %vm133_vm3, %vm134_vm2 }
 0x1b1   :  { %v130_v28 = vsub.f32 1.0, %v129_v27 }
 0x1b3   :  { %v131_v30 = vmul.f32 %v163_v26, %v130_v28 }
 0x1b5   :  { %v132_v32 = vadd.f32 %v163_v26, %v131_v30 }
 0x1b7   :  { %v136_v34 = vsel %vm135_vm4, %v163_v26, %v132_v32 }
 0x1b8   :  { %v141_v35 = vsel %vm138_vm6, %v140_v33, %v136_v34 }
 0x1b9   :  { %144 = vst.msk [vmem:[%s258_s7] sm:$0xff] %vm143_vm5, %v141_v35 }

</bundles_post_ra>
